<compile_context>
chip_gen: v7x
topology: tpu7x:2x2x1
jax: 0.10.0
libtpu: 0.0.40
codegen_flags: <defaults>
</compile_context>

<pallas_src>
import jax
import jax.numpy as jnp
from jax.experimental import pallas as pl
from jax.experimental.pallas import tpu as pltpu

ELEM_LIST = ['C', 'N', 'O', 'S', 'F', 'Si', 'P', 'Cl', 'Br', 'Mg', 'Na', 'Ca',
             'Fe', 'Al', 'I', 'B', 'K', 'Se', 'Zn', 'H', 'Cu', 'Mn', 'unknown']
ATOM_FDIM = len(ELEM_LIST) + 6 + 5 + 4 + 1  # = 39

_VMEM_BUDGET = 40 << 20          # keep streamed working set under ~40 MiB
_VMEM_LIMIT_CAP = 48 << 20       # scoped limit cap (v7x physical VMEM = 64 MiB)


def gather_update_kernel(x_ref, m_ref, wx_ref, wm_ref, b_ref, h_ref):
    # Two MXU matmuls (split of the concatenated linear), f32 accumulation,
    # bias add + ReLU on the VPU in f32, cast only at the final store.
    acc = jnp.dot(x_ref[...], wx_ref[...], preferred_element_type=jnp.float32)
    acc = acc + jnp.dot(m_ref[...], wm_ref[...],
                        preferred_element_type=jnp.float32)
    acc = acc + b_ref[...]                       # (1, H) broadcasts over rows
    h_ref[...] = jnp.maximum(acc, 0.0).astype(h_ref.dtype)


def _round_up(n, m):
    return (n + m - 1) // m * m


def _vmem_footprint(rt, H, x_bytes, m_bytes, out_bytes):
    """Lane-padded, double-buffered VMEM footprint of one grid step (bytes)."""
    x_lanes = _round_up(ATOM_FDIM, 128)          # 39 -> 128
    h_lanes = _round_up(H, 128)
    stream = 2 * (rt * x_lanes * x_bytes         # x tile
                  + rt * h_lanes * m_bytes       # m tile
                  + rt * h_lanes * out_bytes)    # h tile
    weights = 2 * (_round_up(ATOM_FDIM, 8) * h_lanes * x_bytes   # Wx
                   + _round_up(H, 8) * h_lanes * m_bytes         # Wm
                   + 8 * h_lanes * 4)                            # bias (f32)
    return stream + weights


def gather_update(x, m, w, b, *, row_tile=8192, out_dtype=jnp.float32):
    """x: [N, ATOM_FDIM], m: [N, H], w: [ATOM_FDIM+H, H] (transpose of torch
    W_o.weight), b: [H]  ->  h: [N, H] in out_dtype.

    For the bandwidth-optimized path on v6e/v7x, pass x and m already in
    bfloat16 (and optionally out_dtype=jnp.bfloat16).  The wrapper does NOT
    cast the activations itself: that would add a full extra HBM pass.
    """
    N, H = m.shape
    assert x.shape == (N, ATOM_FDIM)
    assert w.shape == (ATOM_FDIM + H, H)
    assert b.shape == (H,)

    # Split the concatenated linear.  Weights are tiny; cast them to match the
    # caller-chosen activation dtypes so bf16 activations hit the bf16 MXU path.
    wx = w[:ATOM_FDIM, :].astype(x.dtype)        # [ATOM_FDIM, H]
    wm = w[ATOM_FDIM:, :].astype(m.dtype)        # [H, H]
    b2 = b.reshape(1, H).astype(jnp.float32)     # epilogue stays f32 (v5e VPU)

    x_bytes = jnp.dtype(x.dtype).itemsize
    m_bytes = jnp.dtype(m.dtype).itemsize
    out_bytes = jnp.dtype(out_dtype).itemsize

    # --- Row-tile selection ------------------------------------------------
    # Large tile to amortize the ~0.35us/step grid overhead; multiple of 8.
    rt = min(row_tile, _round_up(N, 8))
    # v7x megacore: keep >= 4 grid steps when each piece is still non-trivial
    # so ("parallel",) can shard rows across the two TensorCores.
    quarter = _round_up(pl.cdiv(N, 4), 8)
    if quarter >= 512:
        rt = min(rt, quarter)
    # Honest lane-padded VMEM budget (v7x: 64 MiB physical, 32 MiB scoped
    # default; v5e: 16 MiB scoped default) — shrink rt if needed.
    while (_vmem_footprint(rt, H, x_bytes, m_bytes, out_bytes) > _VMEM_BUDGET
           and rt > 512):
        rt = max(512, _round_up(rt // 2, 8))

    footprint = _vmem_footprint(rt, H, x_bytes, m_bytes, out_bytes)
    vmem_limit = int(min(max(footprint + footprint // 4 + (2 << 20), 16 << 20),
                         _VMEM_LIMIT_CAP))

    grid = (pl.cdiv(N, rt),)   # no jnp.pad: partial last block is masked

    return pl.pallas_call(
        gather_update_kernel,
        out_shape=jax.ShapeDtypeStruct((N, H), out_dtype),
        grid_spec=pl.GridSpec(
            grid=grid,
            in_specs=[
                pl.BlockSpec((rt, ATOM_FDIM), lambda i: (i, 0)),   # x tile
                pl.BlockSpec((rt, H),         lambda i: (i, 0)),   # m tile
                pl.BlockSpec((ATOM_FDIM, H),  lambda i: (0, 0)),   # Wx resident
                pl.BlockSpec((H, H),          lambda i: (0, 0)),   # Wm resident
                pl.BlockSpec((1, H),          lambda i: (0, 0)),   # bias resident
            ],
            out_specs=pl.BlockSpec((rt, H), lambda i: (i, 0)),
        ),
        compiler_params=pltpu.CompilerParams(
            dimension_semantics=("parallel",),      # 2 TCs on v7x split tiles
            vmem_limit_bytes=vmem_limit),           # real padded footprint
    )(x, m, wx, wm, b2)


if __name__ == "__main__":
    hidden_size = 32

    key = jax.random.PRNGKey(0)
    kx, km, kw, kb = jax.random.split(key, 4)

    def make_inputs(n_atoms, dtype=jnp.float32):
        x = jax.random.normal(kx, (n_atoms, ATOM_FDIM), dtype=jnp.float32)
        m = jax.random.normal(km, (n_atoms, hidden_size), dtype=jnp.float32)
        return x.astype(dtype), m.astype(dtype)

    # W_o.weight in torch is [H, ATOM_FDIM+H]; we keep its transpose.
    w = jax.random.normal(kw, (ATOM_FDIM + hidden_size, hidden_size),
                          dtype=jnp.float32) * 0.1
    b = jax.random.normal(kb, (hidden_size,), dtype=jnp.float32) * 0.1

    def reference(x, m):
        xc = jnp.concatenate([x.astype(jnp.float32), m.astype(jnp.float32)], 1)
        return jax.nn.relu(xc @ w + b)

    # 1) Tiny f32 case, single block.
    x, m = make_inputs(8)
    h = gather_update(x, m, w, b)
    jax.block_until_ready(h)
    assert h.shape == (8, hidden_size) and h.dtype == jnp.float32
    assert jnp.allclose(h, reference(x, m), atol=1e-5, rtol=1e-5)

    # 2) Non-divisible N with an explicit small row_tile: multi-step grid and
    #    masked partial last block (no jnp.pad anywhere).
    x2, m2 = make_inputs(300)
    h2 = gather_update(x2, m2, w, b, row_tile=128)
    jax.block_until_ready(h2)
    assert h2.shape == (300, hidden_size)
    assert jnp.allclose(h2, reference(x2, m2), atol=1e-5, rtol=1e-5)

    # 3) Default (large-tile) path with enough rows to trigger the >=4-step
    #    megacore split (rt = ceil(N/4) rounded to 8).
    x3, m3 = make_inputs(2080)
    h3 = gather_update(x3, m3, w, b)
    jax.block_until_ready(h3)
    assert h3.shape == (2080, hidden_size)
    assert jnp.allclose(h3, reference(x3, m3), atol=1e-5, rtol=1e-5)

    # 4) bf16-streamed variant: caller supplies bf16 activations directly
    #    (no wrapper cast = no extra HBM pass) and bf16 output halves writeback.
    xb, mb = make_inputs(300, dtype=jnp.bfloat16)
    hb = gather_update(xb, mb, w, b, out_dtype=jnp.bfloat16)
    jax.block_until_ready(hb)
    assert hb.dtype == jnp.bfloat16
    assert jnp.allclose(hb.astype(jnp.float32), reference(xb, mb),
                        atol=5e-2, rtol=5e-2)

    print("KERNEL_OK")
</pallas_src>

<mosaic_0001>
module attributes {stable_mosaic.version = 11 : i64} {
  func.func @gather_update_kernel(%arg0: i32, %arg1: memref<8x39xf32, #tpu.memory_space<vmem>>, %arg2: memref<8x32xf32, #tpu.memory_space<vmem>>, %arg3: memref<39x32xf32, #tpu.memory_space<vmem>>, %arg4: memref<32x32xf32, #tpu.memory_space<vmem>>, %arg5: memref<1x32xf32, #tpu.memory_space<vmem>>, %arg6: memref<8x32xf32, #tpu.memory_space<vmem>>) attributes {dimension_semantics = [#tpu.dimension_semantics<parallel>], iteration_bounds = array<i64: 1>, scalar_prefetch = 0 : i64, scratch_operands = 0 : i64, tpu.core_type = #tpu.core_type<tc>, window_params = [{transform_indices = @transform_0, window_bounds = array<i64: 8, 39>}, {transform_indices = @transform_1, window_bounds = array<i64: 8, 32>}, {pipeline_mode = #tpu.pipeline_mode<synchronous>, transform_indices = @transform_2, window_bounds = array<i64: 39, 32>}, {pipeline_mode = #tpu.pipeline_mode<synchronous>, transform_indices = @transform_3, window_bounds = array<i64: 32, 32>}, {pipeline_mode = #tpu.pipeline_mode<synchronous>, transform_indices = @transform_4, window_bounds = array<i64: 1, 32>}, {transform_indices = @transform_5, window_bounds = array<i64: 8, 32>}]} {
    %c0 = arith.constant 0 : index
    %c0_0 = arith.constant 0 : index
    %0 = vector.load %arg1[%c0, %c0_0] : memref<8x39xf32, #tpu.memory_space<vmem>>, vector<8x39xf32>
    %c0_1 = arith.constant 0 : index
    %c0_2 = arith.constant 0 : index
    %1 = vector.load %arg3[%c0_1, %c0_2] : memref<39x32xf32, #tpu.memory_space<vmem>>, vector<39x32xf32>
    %cst = arith.constant dense<0.000000e+00> : vector<8x32xf32>
    %2 = tpu.matmul %0, %1, %cst {dimension_numbers = #tpu.dot_dimension_numbers<[1], [0], [0], [1], [0, 0, 1, 1], [], []>} : vector<8x39xf32>, vector<39x32xf32>, vector<8x32xf32> -> vector<8x32xf32>
    %c0_3 = arith.constant 0 : index
    %c0_4 = arith.constant 0 : index
    %3 = vector.load %arg2[%c0_3, %c0_4] : memref<8x32xf32, #tpu.memory_space<vmem>>, vector<8x32xf32>
    %c0_5 = arith.constant 0 : index
    %c0_6 = arith.constant 0 : index
    %4 = vector.load %arg4[%c0_5, %c0_6] : memref<32x32xf32, #tpu.memory_space<vmem>>, vector<32x32xf32>
    %cst_7 = arith.constant dense<0.000000e+00> : vector<8x32xf32>
    %5 = tpu.matmul %3, %4, %cst_7 {dimension_numbers = #tpu.dot_dimension_numbers<[1], [0], [0], [1], [0, 0, 1, 1], [], []>} : vector<8x32xf32>, vector<32x32xf32>, vector<8x32xf32> -> vector<8x32xf32>
    %6 = arith.addf %2, %5 : vector<8x32xf32>
    %c0_8 = arith.constant 0 : index
    %c0_9 = arith.constant 0 : index
    %7 = vector.load %arg5[%c0_8, %c0_9] : memref<1x32xf32, #tpu.memory_space<vmem>>, vector<1x32xf32>
    %8 = vector.broadcast %7 : vector<1x32xf32> to vector<8x32xf32>
    %9 = arith.addf %6, %8 : vector<8x32xf32>
    %cst_10 = arith.constant 0.000000e+00 : f32
    %10 = vector.broadcast %cst_10 : f32 to vector<8x32xf32>
    %11 = arith.maximumf %9, %10 : vector<8x32xf32>
    %c0_11 = arith.constant 0 : index
    %c0_12 = arith.constant 0 : index
    %12 = vector.load %arg6[%c0_11, %c0_12] : memref<8x32xf32, #tpu.memory_space<vmem>>, vector<8x32xf32>
    tpu.vector_store %arg6[%c0_11, %c0_12], %11 {strides = array<i32>} : memref<8x32xf32, #tpu.memory_space<vmem>>, vector<8x32xf32>,
    return
  }
  func.func @transform_0(%arg0: i32) -> (i32, i32) {
    %c0_i32 = arith.constant 0 : i32
    %c0_i32_0 = arith.constant 0 : i32
    return %arg0, %c0_i32 : i32, i32
  }
  func.func @transform_1(%arg0: i32) -> (i32, i32) {
    %c0_i32 = arith.constant 0 : i32
    %c0_i32_0 = arith.constant 0 : i32
    return %arg0, %c0_i32 : i32, i32
  }
  func.func @transform_2(%arg0: i32) -> (i32, i32) {
    %c0_i32 = arith.constant 0 : i32
    %c0_i32_0 = arith.constant 0 : i32
    %c0_i32_1 = arith.constant 0 : i32
    return %c0_i32, %c0_i32_0 : i32, i32
  }
  func.func @transform_3(%arg0: i32) -> (i32, i32) {
    %c0_i32 = arith.constant 0 : i32
    %c0_i32_0 = arith.constant 0 : i32
    %c0_i32_1 = arith.constant 0 : i32
    return %c0_i32, %c0_i32_0 : i32, i32
  }
  func.func @transform_4(%arg0: i32) -> (i32, i32) {
    %c0_i32 = arith.constant 0 : i32
    %c0_i32_0 = arith.constant 0 : i32
    %c0_i32_1 = arith.constant 0 : i32
    return %c0_i32, %c0_i32_0 : i32, i32
  }
  func.func @transform_5(%arg0: i32) -> (i32, i32) {
    %c0_i32 = arith.constant 0 : i32
    %c0_i32_0 = arith.constant 0 : i32
    return %arg0, %c0_i32 : i32, i32
  }
}

</mosaic_0001>

<bundles_post_ra>
// kernel: tpu_custom_call.1
= control target key start
LH: loop header
LB: loop body
LE: loop exit
PB: predicated region body
PF: predicated region fallthrough
CT: control target
= control target key end

     0   :  { %v287_v3 = vmov 0.0|0.0   ;;  %vm288_vm0 = vmmov 0   ;;  %v289_v11 = vmov 0.0   ;;  %s371_s0 = inlined_call_operand.vmem [shape: f32[8,39], index: 0, kind: input, shape index: {}]   ;;  %s372_s1 = inlined_call_operand.vmem [shape: f32[8,32], index: 1, kind: input, shape index: {}]   ;;  %s373_s2 = inlined_call_operand.vmem [shape: f32[39,32], index: 2, kind: input, shape index: {}]   ;;  %s374_s3 = inlined_call_operand.vmem [shape: f32[32,32], index: 3, kind: input, shape index: {}]   ;;  %s375_s4 = inlined_call_operand.vmem [shape: f32[1,32], index: 4, kind: input, shape index: {}]   ;;  %s376_s5 = inlined_call_operand.hbm [shape: f32[8,32], index: 5, kind: output, shape index: {}]  }
   0x1   :  { %v22_v0 = vld [vmem:[%s373_s2] sm:$0xff]  ;;  %v23_v1 = vld [vmem:[%s373_s2 + $0x8] sm:$0xff]  ;;  %253 = vmatprep.subr.bf16.mxu1 %v287_v3  ;;  %247 = vmatprep.subr.bf16.mxu0 %v287_v3  ;;  %v24_v6 = vld [vmem:[%s373_s2 + $0x10] sm:$0xff] }
   0x2   :  { %v28_v2 = vld [vmem:[%s374_s3] sm:$0xff]  ;;  %v254_v4 = vpack.c.bf16 %v23_v1, %v22_v0  ;;  %v29_v5 = vld [vmem:[%s374_s3 + $0x8] sm:$0xff]  ;;  %v25_v7 = vld [vmem:[%s373_s2 + $0x18] sm:$0xff]  ;;  %231 = vmatprep.mubr.msk.f32.mxu0 %vm288_vm0, %v289_v11  ;;  %244 = vmatprep.mubr.msk.f32.mxu1 %vm288_vm0, %v289_v11 }
   0x3   :  { %v248_v8 = vpack.c.bf16 %v29_v5, %v28_v2  ;;  %v30_v9 = vld [vmem:[%s374_s3 + $0x10] sm:$0xff]  ;;  %v31_v10 = vld [vmem:[%s374_s3 + $0x18] sm:$0xff]  ;;  %v257_v12 = vpack.c.bf16 %v25_v7, %v24_v6 }
   0x4   :  { %255 = vmatpush3.bf16.msra.mxu1 %v254_v4 }
   0x5   :  { %10 = vsyncpa [#allocation3], 0  ;;  %249 = vmatpush3.bf16.msra.mxu0 %v248_v8  ;;  %256 = vmatprep.subr.bf16.mxu1 %v287_v3  ;;  %v251_v13 = vpack.c.bf16 %v31_v10, %v30_v9  ;;  %v27_v14 = vld [vmem:[%s372_s1] sm:$0xff]  ;;  %vm32_vm1 = vcmask 261120   ;;  %vm110_vm2 = vcmask 1046528   ;;  %vm106_vm3 = vcmask 318464  }
   0x6   :  { %250 = vmatprep.subr.bf16.mxu0 %v287_v3  ;;  %v26_v15 = vld [vmem:[%s373_s2 + $0x20] sm:$0x7f]  ;;  %s290_s2 = smov [#allocation2]  }
   0x7   :  { %v21_v16 = vld [vmem:[%s371_s0] sm:$0xff]  ;;  %s200_s15 = sshll.u32 %s290_s2, 4  ;;  %s201_s15 = int_to_ptr.vmem [resolvable:$true] %s200_s15 }
   0x8   :  { %258 = vmatpush3.bf16.msra.mxu1 %v257_v12  ;;  %v211_v20 = vld [vmem:[%s375_s4] ss:$0 sm:$0xff]  ;;  %s263_s0 = scalar_lea.vmem %s201_s15, 128  ;;  %p268_p1 = scmp.lt.s32.totalorder %s201_s15, %s201_s15 }
   0x9   :  { %252 = vmatpush3.bf16.msra.mxu0 %v251_v13  ;;  %242 = vmatprep.subr.mxu1 %v289_v11  ;;  %p264_p0 = scmp.ne.s32.totalorder %s201_s15, %s263_s0  ;;  %p269_p2 = scmp.lt.s32.totalorder %s263_s0, %s263_s0 }
   0xb   :  { %p270_p3 = por %p269_p2, %p268_p1 }
   0xc   :  { %232 = vmatmul.mubr.msk.f32.vlgmr.msra.gmra.mrb[0].mxu0 %vm32_vm1, %v27_v14  ;;  %243 = vmatpush3.msk.msra.mxu1 %vm110_vm2, %v26_v15 }
   0xd   :  { %245 = vmatmul.mubr.msk.f32.vlgmr.msra.gmra.mrb[0].mxu1 %vm106_vm3, %v21_v16  ;;  %p271_p4 = pnand %p270_p3, %p264_p0 }
  0xdf   :  { %v102_v17 = vpop.f32.mrb[0].mxu0 }
  0xe0   :  { %v233_v18 = vpop.f32.mrb[1].mxu0  ;;  %v180_v19 = vpop.f32.mrb[0].mxu1 }
  0xe1   :  { %v181_v21 = vadd.f32 %v180_v19, %v102_v17  ;;  %v246_v22 = vpop.f32.mrb[1].mxu1 }
  0xe3   :  { %v191_v23 = vadd.f32 %v211_v20, %v181_v21 }
  0xe5   :  { %v192_v24 = vmax.f32 %v191_v23, 0.0 }
  0xe7   :  { %193 = vst.msk [vmem:[#allocation2] sm:$0xff] %vm32_vm1, %v192_v24 }
  0xe8   :  { %274 = shalt.err (!%p271_p4)
}
  0xe9   :  { %s275_s4 = scalar_lea.hbm %s376_s5, 128 }
  0xea   :  { %p276_p5 = scmp.ne.s32.totalorder %s376_s5, %s275_s4  ;;  %p279_p6 = scmp.lt.u32.totalorder %s275_s4, %s376_s5 }
  0xec   :  { %p281_p7 = pnand %p279_p6, %p276_p5 }
  0xee   :  { %284 = shalt.err (!%p281_p7)
}
  0xef   :  { %203 = dma.vmem_to_hbm [thread:$0]  %s201_s15, 128, %s376_s5, [#allocation3]  }
  0xf0   :  { %285 = dma.done.wait [#allocation3], 128  }
  0xf1   :  { %286 = vsyncadd [#allocation3], 4294967168 }
  0xf2   :  { %207 = vsyncpa [#allocation3], 1 }

</bundles_post_ra>
